<compile_context>
chip_gen: v7x
topology: tpu7x:2x2x1
jax: 0.10.0
libtpu: 0.0.40
codegen_flags: <defaults>
</compile_context>

<pallas_src>
import functools
import math

import jax
import jax.numpy as jnp
from jax.experimental import pallas as pl
from jax.experimental.pallas import tpu as pltpu

DEFAULT_NEGATIVE_SLOPE = 0.2
SCALE = math.sqrt(2.0)

_LANE_CHOICES = (512, 256, 128)       # lane-dense widths (multiples of 128)
_DEFAULT_LANE = 512
_SMALL_INPUT_BYTES = 1 << 20          # below this, plain XLA (fusable) wins
_BLOCK_BYTES_BIG_VMEM = 8 << 20       # v5e / v6e: 128 MiB VMEM per core
_BLOCK_BYTES_SMALL_VMEM = 4 << 20     # v7x (64 MiB VMEM per core) / unknown


def _ceil_to(v: int, m: int) -> int:
    return -(-v // m) * m


@functools.lru_cache(maxsize=None)
def _make_kernel(negative_slope: float):
    pos_c = SCALE
    neg_c = negative_slope * SCALE

    def kernel(x_ref, o_ref):
        x = x_ref[...]
        # Folded scale: 1 compare + 1 select + 1 multiply per element.
        scale = jnp.where(x >= 0,
                          jnp.asarray(pos_c, dtype=x.dtype),
                          jnp.asarray(neg_c, dtype=x.dtype))
        o_ref[...] = x * scale

    return kernel


def _tpu_topology():
    """Best-effort (vmem_bytes, num_tensorcores); conservative defaults on failure."""
    vmem = None
    cores = 1
    try:
        info = pltpu.get_tpu_info()
    except Exception:  # not on TPU / API unavailable
        return vmem, cores
    for attr in ("vmem_capacity_bytes", "vmem_bytes", "vmem_size_bytes"):
        v = getattr(info, attr, None)
        if isinstance(v, int) and v > 0:
            vmem = v
            break
    for attr in ("num_cores", "core_count", "num_tensorcores",
                 "tensorcore_count", "cores_per_chip", "num_cores_per_chip"):
        v = getattr(info, attr, None)
        if isinstance(v, int) and v > 0:
            cores = v
            break
    return vmem, cores


def _pallas_apply(x2d, kernel, tile_rows, lane, grid_steps, dim_sem, vmem_limit,
                  donate_input):
    extra = {"input_output_aliases": {0: 0}} if donate_input else {}
    return pl.pallas_call(
        kernel,
        out_shape=jax.ShapeDtypeStruct(x2d.shape, x2d.dtype),
        grid_spec=pltpu.PrefetchScalarGridSpec(
            num_scalar_prefetch=0,
            grid=(grid_steps,),
            in_specs=[pl.BlockSpec((tile_rows, lane), lambda i: (i, 0))],
            out_specs=pl.BlockSpec((tile_rows, lane), lambda i: (i, 0)),
        ),
        compiler_params=pltpu.CompilerParams(
            dimension_semantics=dim_sem,
            vmem_limit_bytes=vmem_limit,
        ),
        **extra,
    )(x2d)


def scaled_leaky_relu(x, negative_slope=DEFAULT_NEGATIVE_SLOPE, *,
                      force_pallas=False, donate_input=False,
                      max_block_bytes=None):
    """Elementwise leaky_relu(x, slope) * sqrt(2). Any shape; same shape/dtype."""
    orig_shape = x.shape
    dtype = x.dtype
    n = x.size
    if n == 0:
        return x
    itemsize = jnp.dtype(dtype).itemsize

    # Tiny activations: launch cost dominates and the custom call blocks XLA
    # fusion with neighboring ops -> plain XLA wins on every generation.
    if not force_pallas and n * itemsize < _SMALL_INPUT_BYTES:
        return scaled_leaky_relu_ref(x, negative_slope)

    vmem_bytes, num_cores = _tpu_topology()

    # Lane width: prefer one that divides n exactly (no pad / no slice-back).
    lane = _DEFAULT_LANE
    for cand in _LANE_CHOICES:
        if n % cand == 0:
            lane = cand
            break
    rows = -(-n // lane)
    needs_pad = rows * lane != n

    # Sub-32-bit dtypes pack along sublanes: keep row tiles sublane-aligned.
    sublane = max(8, 32 // itemsize)

    if max_block_bytes is not None:
        target_block_bytes = int(max_block_bytes)
    elif vmem_bytes is not None and vmem_bytes >= (96 << 20):
        target_block_bytes = _BLOCK_BYTES_BIG_VMEM      # v5e / v6e
    else:
        target_block_bytes = _BLOCK_BYTES_SMALL_VMEM    # v7x or unknown

    max_tile_rows = max(
        sublane, (target_block_bytes // (lane * itemsize)) // sublane * sublane)

    if rows <= max_tile_rows:
        # Single block equal to the full array extent (always layout-legal).
        tile_rows = rows
        grid_steps = 1
    else:
        tile_rows = max_tile_rows
        grid_steps = -(-rows // tile_rows)  # last block may be partial (masked)

    # Only when >1 TensorCore: aim for an even number of grid steps so both
    # cores get work.  Single-TC parts keep the largest tile.
    if num_cores >= 2 and grid_steps % 2 == 1 and rows >= 2 * sublane:
        if grid_steps == 1:
            t2 = _ceil_to(-(-rows // 2), sublane)
        else:
            t2 = (tile_rows // 2 // sublane) * sublane
        if t2 >= sublane:
            s2 = -(-rows // t2)
            if s2 % 2 == 0:
                tile_rows, grid_steps = t2, s2

    block_bytes = tile_rows * lane * itemsize
    # 2 arrays x 2 pipeline buffers x block + slack; never below a known-good
    # floor and far under every generation's physical VMEM.
    vmem_limit = min(max(4 * block_bytes + (4 << 20), 16 << 20), 100 << 20)

    flat = x.reshape(-1)
    if needs_pad:
        # Ragged size only: pad the tail of the last row (< lane elements).
        # f(0) = 0 so the padding is inert; sliced away below.
        flat = jnp.pad(flat, (0, rows * lane - n))
    x2d = flat.reshape(rows, lane)

    kernel = _make_kernel(float(negative_slope))

    core_parallel = getattr(pltpu, "CORE_PARALLEL", None)
    if num_cores >= 2 and core_parallel is not None:
        dim_sem = (core_parallel,)
    else:
        dim_sem = ("arbitrary",)

    try:
        out2d = _pallas_apply(x2d, kernel, tile_rows, lane, grid_steps, dim_sem,
                              vmem_limit, donate_input)
    except Exception:
        if dim_sem == ("arbitrary",):
            raise
        # CORE_PARALLEL unsupported for this grid/chip: retry serial.
        out2d = _pallas_apply(x2d, kernel, tile_rows, lane, grid_steps,
                              ("arbitrary",), vmem_limit, donate_input)

    out_flat = out2d.reshape(-1)
    if needs_pad:
        out_flat = out_flat[:n]
    return out_flat.reshape(orig_shape)


def scaled_leaky_relu_ref(x, negative_slope=DEFAULT_NEGATIVE_SLOPE):
    """Pure-JAX reference matching F.leaky_relu(x, slope) * sqrt(2)."""
    slope = jnp.asarray(negative_slope, x.dtype)
    scale = jnp.asarray(SCALE, x.dtype)
    return jnp.where(x >= 0, x, x * slope) * scale


class ScaledLeakyReLU:
    """Callable analogue of the PyTorch module."""

    def __init__(self, negative_slope=DEFAULT_NEGATIVE_SLOPE):
        self.negative_slope = negative_slope

    def __call__(self, x, **kwargs):
        return scaled_leaky_relu(x, self.negative_slope, **kwargs)


if __name__ == "__main__":
    key = jax.random.PRNGKey(0)
    k1, k2, k3, k4 = jax.random.split(key, 4)
    act = ScaledLeakyReLU(0.2)

    # Small NCHW activation consistent with a StyleGAN2 block (forced onto the
    # Pallas path; the auto path would use plain XLA at this size).
    x = jax.random.normal(k1, (2, 4, 16, 16), dtype=jnp.float32)
    out = jax.block_until_ready(act(x, force_pallas=True))
    assert out.shape == x.shape and out.dtype == x.dtype
    assert jnp.allclose(out, scaled_leaky_relu_ref(x), atol=1e-6, rtol=1e-5)

    # Ragged element count -> exercises the (small) padded path.
    y = jax.random.normal(k2, (3, 5, 17, 7), dtype=jnp.float32)
    out_y = jax.block_until_ready(act(y, force_pallas=True))
    assert jnp.allclose(out_y, scaled_leaky_relu_ref(y), atol=1e-6, rtol=1e-5)

    # bf16 -> exercises dtype-aware (16-row) sublane alignment.
    z = jax.random.normal(k3, (2, 8, 32, 32), dtype=jnp.bfloat16)
    out_z = jax.block_until_ready(act(z, force_pallas=True))
    assert jnp.allclose(out_z.astype(jnp.float32),
                        scaled_leaky_relu_ref(z).astype(jnp.float32),
                        atol=2e-2, rtol=2e-2)

    # Large enough for the automatic Pallas path (single big block) ...
    w = jax.random.normal(k4, (4, 64, 64, 64), dtype=jnp.float32)
    out_w = jax.block_until_ready(act(w))
    assert jnp.allclose(out_w, scaled_leaky_relu_ref(w), atol=1e-6, rtol=1e-5)

    # ... and with ~1 MiB blocks forced, covering a multi-step pipelined grid.
    out_w2 = jax.block_until_ready(act(w, max_block_bytes=1 << 20))
    assert jnp.allclose(out_w2, scaled_leaky_relu_ref(w), atol=1e-6, rtol=1e-5)

    print("KERNEL_OK")
</pallas_src>

<mosaic_0001>
module attributes {stable_mosaic.version = 11 : i64} {
  func.func @kernel(%arg0: i32, %arg1: memref<4x512xf32, #tpu.memory_space<vmem>>, %arg2: memref<4x512xf32, #tpu.memory_space<vmem>>) attributes {dimension_semantics = [#tpu.dimension_semantics<arbitrary>], iteration_bounds = array<i64: 1>, scalar_prefetch = 0 : i64, scratch_operands = 0 : i64, tpu.core_type = #tpu.core_type<tc>, window_params = [{transform_indices = @transform_0, window_bounds = array<i64: 4, 512>}, {transform_indices = @transform_1, window_bounds = array<i64: 4, 512>}]} {
    %c0 = arith.constant 0 : index
    %c0_0 = arith.constant 0 : index
    %0 = vector.load %arg1[%c0, %c0_0] : memref<4x512xf32, #tpu.memory_space<vmem>>, vector<4x512xf32>
    %cst = arith.constant 0.000000e+00 : f32
    %1 = vector.broadcast %cst : f32 to vector<4x512xf32>
    %2 = arith.cmpf oge, %0, %1 : vector<4x512xf32>
    %cst_1 = arith.constant 1.41421354 : f32
    %cst_2 = arith.constant 0.282842726 : f32
    %3 = vector.broadcast %cst_1 : f32 to vector<4x512xf32>
    %4 = vector.broadcast %cst_2 : f32 to vector<4x512xf32>
    %5 = arith.select %2, %3, %4 : vector<4x512xi1>, vector<4x512xf32>
    %6 = arith.mulf %0, %5 : vector<4x512xf32>
    %c0_3 = arith.constant 0 : index
    %c0_4 = arith.constant 0 : index
    %7 = vector.load %arg2[%c0_3, %c0_4] : memref<4x512xf32, #tpu.memory_space<vmem>>, vector<4x512xf32>
    tpu.vector_store %arg2[%c0_3, %c0_4], %6 {strides = array<i32>} : memref<4x512xf32, #tpu.memory_space<vmem>>, vector<4x512xf32>,
    return
  }
  func.func @transform_0(%arg0: i32) -> (i32, i32) {
    %c0_i32 = arith.constant 0 : i32
    %c0_i32_0 = arith.constant 0 : i32
    return %arg0, %c0_i32 : i32, i32
  }
  func.func @transform_1(%arg0: i32) -> (i32, i32) {
    %c0_i32 = arith.constant 0 : i32
    %c0_i32_0 = arith.constant 0 : i32
    return %arg0, %c0_i32 : i32, i32
  }
}

</mosaic_0001>

<bundles_post_ra>
// kernel: tpu_custom_call.1
= control target key start
LH: loop header
LB: loop body
LE: loop exit
PB: predicated region body
PF: predicated region fallthrough
CT: control target
= control target key end

     0   :  { %6 = vsyncpa [#allocation3], 0  ;;  %s134_s0 = inlined_call_operand.hbm [shape: f32[4,512], index: 0, kind: input, shape index: {}]   ;;  %s135_s1 = inlined_call_operand.hbm [shape: f32[4,512], index: 1, kind: output, shape index: {}]  }
   0x1   :  { %7 = vsyncpa [#allocation4], 0  ;;  %s97_s6 = smov [#allocation2]   ;;  %s49_s10 = scalar_lea.hbm %s134_s0, 256 }
   0x2   :  { %s14_s7 = sshll.u32 %s97_s6, 4  ;;  %p50_p0 = scmp.ne.s32.totalorder %s134_s0, %s49_s10  ;;  %s15_s7 = int_to_ptr.vmem [resolvable:$true] %s14_s7 }
   0x3   :  { %p53_p1 = scmp.lt.u32.totalorder %s49_s10, %s134_s0 }
   0x5   :  { %p55_p2 = pnand %p53_p1, %p50_p0 }
   0x7   :  { %58 = shalt.err (!%p55_p2)
}
   0x8   :  { %s59_s15 = scalar_lea.vmem %s15_s7, 256  ;;  %p64_p4 = scmp.lt.s32.totalorder %s15_s7, %s15_s7 }
   0x9   :  { %p60_p3 = scmp.ne.s32.totalorder %s15_s7, %s59_s15  ;;  %p65_p5 = scmp.lt.s32.totalorder %s59_s15, %s59_s15 }
   0xb   :  { %p66_p6 = por %p65_p5, %p64_p4 }
   0xd   :  { %p67_p7 = pnand %p66_p6, %p60_p3 }
   0xf   :  { %70 = shalt.err (!%p67_p7)
}
  0x10   :  { %17 = dma.hbm_to_vmem [thread:$0]  %s134_s0, 256, %s15_s7, [#allocation3]  }
  0x11   :  { %93 = dma.done.wait [#allocation3], 256  }
  0x12   :  { %94 = vsyncadd [#allocation3], 4294967040  ;;  %v21_v0 = vld [vmem:[#allocation2] sm:$0xff]  ;;  %v22_v1 = vld [vmem:[#allocation2 + $0x8] sm:$0xff]  ;;  %s98_s18 = smov [#allocation5]  }
  0x13   :  { %s37_s19 = sshll.u32 %s98_s18, 4  ;;  %vm23_vm0 = vcmp.ge.f32.partialorder %v21_v0, 0.0  ;;  %vm24_vm1 = vcmp.ge.f32.partialorder %v22_v1, 0.0  ;;  %v99_v2 = vmov 0.28284273   ;;  %s38_s19 = int_to_ptr.vmem [resolvable:$true] %s37_s19 }
  0x14   :  { %v25_v3 = vsel %vm23_vm0, 1.4142135, %v99_v2  ;;  %v26_v4 = vsel %vm24_vm1, 1.4142135, %v99_v2  ;;  %s71_s20 = scalar_lea.vmem %s38_s19, 256  ;;  %p76_p9 = scmp.lt.s32.totalorder %s38_s19, %s38_s19 }
  0x15   :  { %v27_v5 = vmul.f32 %v25_v3, %v21_v0  ;;  %v28_v6 = vmul.f32 %v26_v4, %v22_v1  ;;  %p72_p8 = scmp.ne.s32.totalorder %s38_s19, %s71_s20  ;;  %p77_p10 = scmp.lt.s32.totalorder %s71_s20, %s71_s20 }
  0x17   :  { %29 = vst [vmem:[#allocation5] sm:$0xff] %v27_v5  ;;  %30 = vst [vmem:[#allocation5 + $0x8] sm:$0xff] %v28_v6  ;;  %p78_p11 = por %p77_p10, %p76_p9 }
  0x19   :  { %p79_p12 = pnand %p78_p11, %p72_p8 }
  0x1b   :  { %82 = shalt.err (!%p79_p12)
}
  0x1c   :  { %s83_s22 = scalar_lea.hbm %s135_s1, 256 }
  0x1d   :  { %p84_p13 = scmp.ne.s32.totalorder %s135_s1, %s83_s22  ;;  %p87_p0 = scmp.lt.u32.totalorder %s83_s22, %s135_s1 }
  0x1f   :  { %p89_p1 = pnand %p87_p0, %p84_p13 }
  0x21   :  { %92 = shalt.err (!%p89_p1)
}
  0x22   :  { %40 = dma.vmem_to_hbm [thread:$0]  %s38_s19, 256, %s135_s1, [#allocation4]  }
  0x23   :  { %95 = dma.done.wait [#allocation4], 256  }
  0x24   :  { %96 = vsyncadd [#allocation4], 4294967040 }
  0x25   :  { %44 = vsyncpa [#allocation3], 1 }
  0x26   :  { %45 = vsyncpa [#allocation4], 1 }

</bundles_post_ra>
